<compile_context>
chip_gen: v7x
topology: tpu7x:2x2x1
jax: 0.10.0
libtpu: 0.0.40
codegen_flags: <defaults>
</compile_context>

<pallas_src>
import jax
import jax.numpy as jnp
from jax.experimental import pallas as pl
from jax.experimental.pallas import tpu as pltpu


def _dice_wce_kernel(x_ref, t_ref, inter_ref, card_ref, ce_ref):
    """(1, C, TH, W) logits tile + (1, TH, W) int32 targets -> per-tile partials."""
    x = x_ref[0].astype(jnp.float32)                       # (C, TH, W)
    tgt = t_ref[0]                                          # (TH, W) int32

    # Numerically-stable softmax over the (leading) class axis: pure VPU.
    cls_max = jnp.max(x, axis=0, keepdims=True)             # (1, TH, W)
    shifted = x - cls_max
    ex = jnp.exp(shifted)
    sum_ex = jnp.sum(ex, axis=0, keepdims=True)             # (1, TH, W)
    inv = pl.reciprocal(sum_ex)                             # exact; EUP slot
    probas = ex * inv                                       # (C, TH, W)

    # One-hot of the target class via iota compare (no gather needed).
    cls_idx = jax.lax.broadcasted_iota(jnp.int32, x.shape, 0)
    one_hot = (cls_idx == tgt[None, :, :]).astype(jnp.float32)   # (C, TH, W)

    # Dice partials: torch dims=(0,2) == (batch, H).  Reduce the TH rows here;
    # the wrapper sums the remaining (B, H/TH) grid partials.
    inter_ref[0, 0] = jnp.sum(probas * one_hot, axis=1)     # (C, W)
    card_ref[0, 0] = jnp.sum(probas + one_hot, axis=1)      # (C, W)

    # Per-pixel NLL without materializing log_probs:
    #   -log_softmax[target] = log(sum_ex) - shifted[target]
    picked = jnp.sum(one_hot * shifted, axis=0)             # (TH, W)
    nll = jnp.log(sum_ex)[0] - picked                       # (TH, W)
    ce_ref[0, 0, 0] = jnp.sum(nll, axis=0)                  # (W,)


def _choose_block_rows(h, c, w, in_itemsize, budget_bytes=4 << 20):
    """Largest TH dividing H (multiple of 8, or H itself) within the VMEM budget."""
    fallback = h
    for cand in range(h, 0, -1):
        if h % cand:
            continue
        if cand != h and cand % 8:
            continue
        fallback = cand
        tile_bytes = c * cand * w * in_itemsize + cand * w * 4  # logits + targets
        if tile_bytes <= budget_bytes:
            return cand
    return fallback


def dice_wce_loss(inputs, targets, smooth=1.0, *, block_rows=None):
    """inputs: (B, C, H, W) float (f32/bf16), targets: (B, H, W) int -> scalar f32."""
    b, c, h, w = inputs.shape
    t = targets.astype(jnp.int32)                           # (B, H, W)

    th = (_choose_block_rows(h, c, w, inputs.dtype.itemsize)
          if block_rows is None else block_rows)
    assert h % th == 0 and (th == h or th % 8 == 0), (
        "block_rows must divide H and be a multiple of 8 (or equal H)")
    nh = h // th

    # NOTE: out blocks have C (<8) / W (<128 for tiny W) minor dims -> masked
    # stores; negligible at realistic TH since partial writeback is O(C*W) per
    # O(C*TH*W) of streamed input.
    inter, card, ce = pl.pallas_call(
        _dice_wce_kernel,
        out_shape=(
            jax.ShapeDtypeStruct((b, nh, c, w), jnp.float32),
            jax.ShapeDtypeStruct((b, nh, c, w), jnp.float32),
            jax.ShapeDtypeStruct((b, nh, 1, w), jnp.float32),
        ),
        grid=(b, nh),
        in_specs=[
            pl.BlockSpec((1, c, th, w), lambda bi, hi: (bi, 0, hi, 0)),
            pl.BlockSpec((1, th, w), lambda bi, hi: (bi, hi, 0)),
        ],
        out_specs=(
            pl.BlockSpec((1, 1, c, w), lambda bi, hi: (bi, hi, 0, 0)),
            pl.BlockSpec((1, 1, c, w), lambda bi, hi: (bi, hi, 0, 0)),
            pl.BlockSpec((1, 1, 1, w), lambda bi, hi: (bi, hi, 0, 0)),
        ),
        compiler_params=pltpu.CompilerParams(
            dimension_semantics=("parallel", "parallel"),
            vmem_limit_bytes=32 << 20),
    )(inputs, t)

    # Tiny final reductions on the (B, H/TH, C, W) partials.
    intersection = jnp.sum(inter, axis=(0, 1))              # (C, W)
    cardinality = jnp.sum(card, axis=(0, 1))                # (C, W)
    dice = jnp.mean((2.0 * intersection + smooth) / (cardinality + smooth))
    dice_loss = 1.0 - dice
    wce = jnp.sum(ce) / jnp.float32(b * h * w)
    # TODO(synk): optional per-class CE weight (self.weight) not implemented;
    # the module's default construction uses weight=None, which this matches.
    return wce + dice_loss


def _reference(inputs, targets, smooth=1.0):
    """Pure-JAX mirror of the PyTorch forward (including dims=(0,2) quirk)."""
    _, c, _, _ = inputs.shape
    x = inputs.astype(jnp.float32)
    one_hot = jax.nn.one_hot(targets, c, dtype=jnp.float32)      # (B,H,W,C)
    one_hot = jnp.transpose(one_hot, (0, 3, 1, 2))               # (B,C,H,W)
    probas = jax.nn.softmax(x, axis=1)
    dims = (0, 2)                                                # torch: (0,) + range(2, targets.ndim)
    intersection = jnp.sum(probas * one_hot, axis=dims)
    cardinality = jnp.sum(probas + one_hot, axis=dims)
    dice_loss = 1.0 - jnp.mean(
        (2.0 * intersection + smooth) / (cardinality + smooth))
    log_probs = jax.nn.log_softmax(x, axis=1)
    wce = jnp.mean(jnp.sum(-one_hot * log_probs, axis=1))
    return wce + dice_loss


if __name__ == "__main__":
    key = jax.random.PRNGKey(0)
    ki, kt, ki2, kt2 = jax.random.split(key, 4)

    # Case 1: small shapes matching the module spec (single H-tile per batch).
    b, c, h, w = 2, 4, 16, 16
    inputs = jax.random.normal(ki, (b, c, h, w), dtype=jnp.float32)
    targets = jax.random.randint(kt, (b, h, w), 0, c, dtype=jnp.int32)

    loss = jax.block_until_ready(dice_wce_loss(inputs, targets, smooth=1.0))
    ref = _reference(inputs, targets, smooth=1.0)
    assert jnp.allclose(loss, ref, atol=1e-5, rtol=1e-5), (loss, ref)

    # Case 2: multi-tile grid (grid=(2,4)) + bf16 ingest path (widened in-VMEM).
    b2, c2, h2, w2 = 2, 4, 32, 128
    inputs2 = jax.random.normal(ki2, (b2, c2, h2, w2), dtype=jnp.bfloat16)
    targets2 = jax.random.randint(kt2, (b2, h2, w2), 0, c2, dtype=jnp.int32)

    loss2 = jax.block_until_ready(
        dice_wce_loss(inputs2, targets2, smooth=1.0, block_rows=8))
    ref2 = _reference(inputs2, targets2, smooth=1.0)
    assert jnp.allclose(loss2, ref2, atol=1e-4, rtol=1e-4), (loss2, ref2)

    print("KERNEL_OK")
</pallas_src>

<mosaic_0001>
module attributes {stable_mosaic.version = 11 : i64} {
  func.func @_dice_wce_kernel(%arg0: i32, %arg1: i32, %arg2: memref<1x4x16x16xf32, #tpu.memory_space<vmem>>, %arg3: memref<1x16x16xi32, #tpu.memory_space<vmem>>, %arg4: memref<1x1x4x16xf32, #tpu.memory_space<vmem>>, %arg5: memref<1x1x4x16xf32, #tpu.memory_space<vmem>>, %arg6: memref<1x1x1x16xf32, #tpu.memory_space<vmem>>) attributes {dimension_semantics = [#tpu.dimension_semantics<parallel>, #tpu.dimension_semantics<parallel>], iteration_bounds = array<i64: 2, 1>, scalar_prefetch = 0 : i64, scratch_operands = 0 : i64, tpu.core_type = #tpu.core_type<tc>, window_params = [{transform_indices = @transform_0, window_bounds = array<i64: 1, 4, 16, 16>}, {transform_indices = @transform_1, window_bounds = array<i64: 1, 16, 16>}, {transform_indices = @transform_2, window_bounds = array<i64: 1, 1, 4, 16>}, {transform_indices = @transform_3, window_bounds = array<i64: 1, 1, 4, 16>}, {transform_indices = @transform_4, window_bounds = array<i64: 1, 1, 1, 16>}]} {
    %c0 = arith.constant 0 : index
    %c0_0 = arith.constant 0 : index
    %c0_1 = arith.constant 0 : index
    %c0_2 = arith.constant 0 : index
    %0 = vector.load %arg2[%c0, %c0_0, %c0_1, %c0_2] : memref<1x4x16x16xf32, #tpu.memory_space<vmem>>, vector<1x4x16x16xf32>
    %1 = vector.shape_cast %0 : vector<1x4x16x16xf32> to vector<4x16x16xf32>
    %c0_3 = arith.constant 0 : index
    %c0_4 = arith.constant 0 : index
    %c0_5 = arith.constant 0 : index
    %2 = vector.load %arg3[%c0_3, %c0_4, %c0_5] : memref<1x16x16xi32, #tpu.memory_space<vmem>>, vector<1x16x16xi32>
    %3 = vector.shape_cast %2 : vector<1x16x16xi32> to vector<16x16xi32>
    %cst = arith.constant dense<0xFF800000> : vector<16x16xf32>
    %4 = vector.multi_reduction <maximumf>, %1, %cst [0] : vector<4x16x16xf32> to vector<16x16xf32>
    %5 = vector.shape_cast %4 : vector<16x16xf32> to vector<1x16x16xf32>
    %6 = vector.broadcast %5 : vector<1x16x16xf32> to vector<4x16x16xf32>
    %7 = arith.subf %1, %6 : vector<4x16x16xf32>
    %8 = math.exp %7 : vector<4x16x16xf32>
    %cst_6 = arith.constant dense<0.000000e+00> : vector<16x16xf32>
    %9 = vector.multi_reduction <add>, %8, %cst_6 [0] : vector<4x16x16xf32> to vector<16x16xf32>
    %10 = vector.shape_cast %9 : vector<16x16xf32> to vector<1x16x16xf32>
    %11 = tpu.reciprocal %10 : vector<1x16x16xf32> -> vector<1x16x16xf32>
    %12 = vector.broadcast %11 : vector<1x16x16xf32> to vector<4x16x16xf32>
    %13 = arith.mulf %8, %12 : vector<4x16x16xf32>
    %14 = tpu.iota {dimensions = array<i32: 0>} : vector<4x16x16xi32>
    %15 = vector.shape_cast %3 : vector<16x16xi32> to vector<1x16x16xi32>
    %16 = vector.broadcast %15 : vector<1x16x16xi32> to vector<4x16x16xi32>
    %17 = arith.cmpi eq, %14, %16 : vector<4x16x16xi32>
    %18 = arith.extui %17 : vector<4x16x16xi1> to vector<4x16x16xi32>
    %19 = arith.sitofp %18 : vector<4x16x16xi32> to vector<4x16x16xf32>
    %20 = arith.mulf %13, %19 : vector<4x16x16xf32>
    %cst_7 = arith.constant dense<0.000000e+00> : vector<4x16xf32>
    %21 = vector.multi_reduction <add>, %20, %cst_7 [1] : vector<4x16x16xf32> to vector<4x16xf32>
    %c0_8 = arith.constant 0 : index
    %c0_9 = arith.constant 0 : index
    %c0_10 = arith.constant 0 : index
    %c0_11 = arith.constant 0 : index
    %22 = vector.load %arg4[%c0_8, %c0_9, %c0_10, %c0_11] : memref<1x1x4x16xf32, #tpu.memory_space<vmem>>, vector<1x1x4x16xf32>
    %23 = vector.shape_cast %22 : vector<1x1x4x16xf32> to vector<4x16xf32>
    %24 = vector.shape_cast %21 : vector<4x16xf32> to vector<1x1x4x16xf32>
    tpu.vector_store %arg4[%c0_8, %c0_9, %c0_10, %c0_11], %24 {strides = array<i32>} : memref<1x1x4x16xf32, #tpu.memory_space<vmem>>, vector<1x1x4x16xf32>,
    %25 = arith.addf %13, %19 : vector<4x16x16xf32>
    %cst_12 = arith.constant dense<0.000000e+00> : vector<4x16xf32>
    %26 = vector.multi_reduction <add>, %25, %cst_12 [1] : vector<4x16x16xf32> to vector<4x16xf32>
    %c0_13 = arith.constant 0 : index
    %c0_14 = arith.constant 0 : index
    %c0_15 = arith.constant 0 : index
    %c0_16 = arith.constant 0 : index
    %27 = vector.load %arg5[%c0_13, %c0_14, %c0_15, %c0_16] : memref<1x1x4x16xf32, #tpu.memory_space<vmem>>, vector<1x1x4x16xf32>
    %28 = vector.shape_cast %27 : vector<1x1x4x16xf32> to vector<4x16xf32>
    %29 = vector.shape_cast %26 : vector<4x16xf32> to vector<1x1x4x16xf32>
    tpu.vector_store %arg5[%c0_13, %c0_14, %c0_15, %c0_16], %29 {strides = array<i32>} : memref<1x1x4x16xf32, #tpu.memory_space<vmem>>, vector<1x1x4x16xf32>,
    %30 = arith.mulf %19, %7 : vector<4x16x16xf32>
    %cst_17 = arith.constant dense<0.000000e+00> : vector<16x16xf32>
    %31 = vector.multi_reduction <add>, %30, %cst_17 [0] : vector<4x16x16xf32> to vector<16x16xf32>
    %32 = math.log %10 : vector<1x16x16xf32>
    %33 = vector.shape_cast %32 : vector<1x16x16xf32> to vector<16x16xf32>
    %34 = arith.subf %33, %31 : vector<16x16xf32>
    %cst_18 = arith.constant dense<0.000000e+00> : vector<16xf32>
    %35 = vector.multi_reduction <add>, %34, %cst_18 [0] : vector<16x16xf32> to vector<16xf32>
    %c0_19 = arith.constant 0 : index
    %c0_20 = arith.constant 0 : index
    %c0_21 = arith.constant 0 : index
    %c0_22 = arith.constant 0 : index
    %36 = vector.load %arg6[%c0_19, %c0_20, %c0_21, %c0_22] : memref<1x1x1x16xf32, #tpu.memory_space<vmem>>, vector<1x1x1x16xf32>
    %37 = vector.shape_cast %36 : vector<1x1x1x16xf32> to vector<16xf32>
    %38 = vector.shape_cast %35 : vector<16xf32> to vector<1x1x1x16xf32>
    tpu.vector_store %arg6[%c0_19, %c0_20, %c0_21, %c0_22], %38 {strides = array<i32>} : memref<1x1x1x16xf32, #tpu.memory_space<vmem>>, vector<1x1x1x16xf32>,
    return
  }
  func.func @transform_0(%arg0: i32, %arg1: i32) -> (i32, i32, i32, i32) {
    %c0_i32 = arith.constant 0 : i32
    %c0_i32_0 = arith.constant 0 : i32
    %c0_i32_1 = arith.constant 0 : i32
    return %arg0, %c0_i32, %arg1, %c0_i32_0 : i32, i32, i32, i32
  }
  func.func @transform_1(%arg0: i32, %arg1: i32) -> (i32, i32, i32) {
    %c0_i32 = arith.constant 0 : i32
    %c0_i32_0 = arith.constant 0 : i32
    return %arg0, %arg1, %c0_i32 : i32, i32, i32
  }
  func.func @transform_2(%arg0: i32, %arg1: i32) -> (i32, i32, i32, i32) {
    %c0_i32 = arith.constant 0 : i32
    %c0_i32_0 = arith.constant 0 : i32
    %c0_i32_1 = arith.constant 0 : i32
    return %arg0, %arg1, %c0_i32, %c0_i32_0 : i32, i32, i32, i32
  }
  func.func @transform_3(%arg0: i32, %arg1: i32) -> (i32, i32, i32, i32) {
    %c0_i32 = arith.constant 0 : i32
    %c0_i32_0 = arith.constant 0 : i32
    %c0_i32_1 = arith.constant 0 : i32
    return %arg0, %arg1, %c0_i32, %c0_i32_0 : i32, i32, i32, i32
  }
  func.func @transform_4(%arg0: i32, %arg1: i32) -> (i32, i32, i32, i32) {
    %c0_i32 = arith.constant 0 : i32
    %c0_i32_0 = arith.constant 0 : i32
    %c0_i32_1 = arith.constant 0 : i32
    return %arg0, %arg1, %c0_i32, %c0_i32_0 : i32, i32, i32, i32
  }
}

</mosaic_0001>

<bundles_post_ra>
// kernel: tpu_custom_call.1
= control target key start
LH: loop header
LB: loop body
LE: loop exit
PB: predicated region body
PF: predicated region fallthrough
CT: control target
= control target key end

     0   :  { %s1561_s0 = inlined_call_operand.hbm [shape: f32[2,4,16,16], index: 0, kind: input, shape index: {}]   ;;  %s1562_s1 = inlined_call_operand.hbm [shape: s32[2,16,16], index: 1, kind: input, shape index: {}]   ;;  %s1563_s2 = inlined_call_operand.hbm [shape: f32[2,1,4,16], index: 2, kind: output, shape index: {0}]   ;;  %s1564_s3 = inlined_call_operand.hbm [shape: f32[2,1,4,16], index: 3, kind: output, shape index: {1}]   ;;  %s1565_s4 = inlined_call_operand.hbm [shape: f32[2,1,1,16], index: 4, kind: output, shape index: {2}]  }
   0x1   :  { %1570 = sst [smem:[#allocation15_spill]] %s1561_s0 }
   0x2   :  { %10 = vsyncpa [#allocation3], 0 }
   0x3   :  { %12 = vsyncpa [#allocation3 + $0x1], 0 }
   0x4   :  { %13 = vsyncpa [#allocation6], 0 }
   0x5   :  { %15 = vsyncpa [#allocation6 + $0x1], 0 }
   0x6   :  { %16 = vsyncpa [#allocation4], 0 }
   0x7   :  { %18 = vsyncpa [#allocation4 + $0x1], 0 }
   0x8   :  { %19 = vsyncpa [#allocation9], 0 }
   0x9   :  { %21 = vsyncpa [#allocation9 + $0x1], 0  ;;  %s1143_s15 = smov 0   ;;  %s1145_s16 = smov 0  }
   0xa   :  { %s1147_s17 = smov 0   ;;  %s1149_s18 = smov 0  }
   0xb   :  { %s1151_s19 = smov 0   ;;  %s1153_s20 = smov 0  }
   0xc LB: > { %s1174_s21 = sadd.s32 4294967295, %s1108_s20   ;;  %s1567_s22 = sadd.s32 4294967294, %s1108_s20   ;;  %s1108_s20 = sphi %s1153_s20, %s27_s20   ;;  %s1104_s19 = sphi %s1151_s19, %s1589_s19   ;;  %s1100_s18 = sphi %s1149_s18, %s1588_s18   ;;  %s1096_s17 = sphi %s1147_s17, %s1587_s17   ;;  %s1092_s16 = sphi %s1145_s16, %s1586_s16   ;;  %s1088_s15 = sphi %s1143_s15, %s1585_s15  }
   0xd   : > { %s39_s23 = sadd.s32 1, %s1104_s19  ;;  %s48_s24 = sadd.s32 1, %s1096_s17 }
   0xe   : > { %p41_p0 = scmp.ge.s32.totalorder %s39_s23, 2  ;;  %p55_p1 = scmp.ne.s32.totalorder %s1096_s17, %s1092_s16 }
   0xf   : > { %p56_p2 = scmp.eq.s32.totalorder %s1108_s20, 0  ;;  %p61_p3 = scmp.ne.s32.totalorder %s1092_s16, %s1088_s15 }
  0x10   : > { %s1591_s23 = smov (%p41_p0, %s39_s23), 0  ;;  %p62_p5 = scmp.eq.s32.totalorder %s1174_s21, 0 }
  0x11   : > { %p1186_p4 = por %p56_p2, %p55_p1  ;;  %s43_s26 = ssub.s32 %s1104_s19, %s1591_s23 }
  0x12   : > { %p115_p6 = scmp.eq.s32.totalorder %s1174_s21, 1  ;;  %p46_p7 = scmp.eq.s32.totalorder %s43_s26, 0 }
  0x13   : > { %p1194_p8 = por %p62_p5, %p61_p3  ;;  %p121_p10 = scmp.eq.s32.totalorder %s1567_s22, 1 }
  0x14   : > { %p1198_p9 = por %p115_p6, %p55_p1  ;;  %p825_p13 = scmp.lt.s32.totalorder %s1108_s20, 2 }
  0x15   : > { %s1572_s27 = scalar_select %p1194_p8, 1, 0 }
  0x16   : > { %s1573_s28 = scalar_select %p1198_p9, 1, 0 }
  0x17   : > { %s1205_s29 = scalar_select %p46_p7, %s1096_s17, %s48_s24  }
  0x18   : > { %p1207_p11 = por %p121_p10, %p61_p3  ;;  %s1214_s5 = sand.u32 1, %s1096_s17  }
  0x19   : > { %s770_s6 = sshll.u32 %s1214_s5, 6  ;;  %s796_s7 = sshll.u32 %s1104_s19, 10 }
  0x1a   : > { %s1574_s30 = scalar_select %p1207_p11, 1, 0 }
  0x1b   : > { %s1575_s0 = sld [smem:[#allocation15_spill]]  ;;  %s201_s11 = scalar_lea.vmem [#allocation2], %s770_s6 }
  0x1c   : > { %s210_s12 = sshll.u32 %s201_s11, 4  ;;  %p1227_p0 = pnand %p825_p13, %p1186_p4  ;;  %s1223_s12 = int_to_ptr.vmem [resolvable:$true] %s210_s12 }
  0x1d   : > { %s198_s14 = scalar_lea.sflag [#allocation3], %s1214_s5 }
  0x1e   : > { %p904_p3 = pneg %p1227_p0 }
  0x21   : > { %s1221_s10 = scalar_lea.hbm %s1575_s0, %s796_s7  ;;  %s907_s25 = scalar_lea.hbm %s1575_s0, 2048 }
  0x22   : > { %s902_s24 = scalar_lea.hbm %s1221_s10, 1024  ;;  %p908_p4 = scmp.lt.u32.totalorder %s1221_s10, %s1575_s0 }
  0x23   : > { %p903_p2 = scmp.ne.s32.totalorder %s1221_s10, %s902_s24  ;;  %p909_p7 = scmp.lt.u32.totalorder %s907_s25, %s902_s24 }
  0x24   : > { %p911_p13 = scmp.lt.u32.totalorder %s902_s24, %s1221_s10 }
  0x25   : > { %p905_p5 = pnand %p904_p3, %p903_p2  ;;  %p910_p10 = por %p909_p7, %p908_p4 }
  0x27   : > { %p906_p6 = pneg %p905_p5  ;;  %p912_p12 = por %p911_p13, %p910_p10 }
  0x29   : > { %p913_p1 = pnand %p912_p12, %p906_p6 }
  0x2b   : > { %916 = shalt.err (!%p913_p1)
}
  0x2c   : > { %s917_s9 = scalar_lea.vmem %s1223_s12, 1024  ;;  %s1110_s11 = smov [#allocation2]  }
  0x2d   : > { %p918_p2 = scmp.ne.s32.totalorder %s1223_s12, %s917_s9  ;;  %s922_s26 = sshll.u32 %s1110_s11, 4  ;;  %s923_s26 = int_to_ptr.vmem [resolvable:$false] %s922_s26 }
  0x2e   : > { %s924_s6 = scalar_lea.vmem %s923_s26, 2048  ;;  %p925_p9 = scmp.lt.s32.totalorder %s1223_s12, %s923_s26 }
  0x2f   : > { %p920_p5 = pnand %p918_p2, %p904_p3  ;;  %p926_p4 = scmp.lt.s32.totalorder %s924_s6, %s917_s9 }
  0x31   : > { %p921_p11 = pneg %p920_p5  ;;  %p927_p7 = por %p926_p4, %p925_p9 }
  0x33   : > { %p928_p10 = pnand %p927_p7, %p921_p11 }
  0x35   : > { %931 = shalt.err (!%p928_p10)
}
  0x36   : > { %s1568_s24 = smov 128   ;;  %s1112_s25 = smov 8  }
  0x37   : > { %811 = dma.hbm_to_vmem [thread:$0]  (!%p1227_p0), %s1221_s10, 1024, %s1223_s12, %s198_s14, %s1568_s24, %s1568_s24, %s1112_s25  }
  0x38   : > { %p241_p9 = scmp.lt.s32.totalorder %s1108_s20, 3  ;;  %s773_s7 = sshll.u32 %s1214_s5, 4 }
  0x39   : > { %s797_s8 = sshll.u32 %s1104_s19, 8  ;;  %p1577_p11 = scmp.ge.s32.totalorder %s1108_s20, 1 }
  0x3a   : > { %s1275_s6 = scalar_lea.hbm %s1562_s1, %s797_s8  ;;  %s224_s22 = scalar_lea.vmem [#allocation5], %s773_s7 }
  0x3b   : > { %p1268_p12 = pnand %p1577_p11, %p241_p9  ;;  %s233_s0 = sshll.u32 %s224_s22, 4  ;;  %s1277_s0 = int_to_ptr.vmem [resolvable:$true] %s233_s0 }
  0x3c   : > { %s221_s10 = scalar_lea.sflag [#allocation6], %s1214_s5  ;;  %s932_s12 = scalar_lea.hbm %s1275_s6, 256 }
  0x3d   : > { %p933_p1 = scmp.ne.s32.totalorder %s1275_s6, %s932_s12  ;;  %s937_s8 = scalar_lea.hbm %s1562_s1, 512 }
  0x3e   : > { %p938_p2 = scmp.lt.u32.totalorder %s1275_s6, %s1562_s1  ;;  %p939_p5 = scmp.lt.u32.totalorder %s937_s8, %s932_s12 }
  0x3f   : > { %p935_p6 = pnand %p933_p1, %p904_p3  ;;  %p941_p7 = scmp.lt.u32.totalorder %s932_s12, %s1275_s6 }
  0x40   : > { %p940_p4 = por %p939_p5, %p938_p2 }
  0x41   : > { %p936_p13 = pneg %p935_p6 }
  0x42   : > { %p942_p10 = por %p941_p7, %p940_p4 }
  0x44   : > { %p943_p9 = pnand %p942_p10, %p936_p13 }
  0x46   : > { %946 = shalt.err (!%p943_p9)
}
  0x47   : > { %s947_s22 = scalar_lea.vmem %s1277_s0, 256  ;;  %s1113_s24 = smov [#allocation5]  }
  0x48   : > { %p948_p11 = scmp.ne.s32.totalorder %s1277_s0, %s947_s22  ;;  %s952_s7 = sshll.u32 %s1113_s24, 4  ;;  %s953_s7 = int_to_ptr.vmem [resolvable:$false] %s952_s7 }
  0x49   : > { %s954_s14 = scalar_lea.vmem %s953_s7, 512  ;;  %p955_p8 = scmp.lt.s32.totalorder %s1277_s0, %s953_s7 }
  0x4a   : > { %p950_p1 = pnand %p948_p11, %p904_p3  ;;  %p956_p2 = scmp.lt.s32.totalorder %s954_s14, %s947_s22 }
  0x4c   : > { %p951_p6 = pneg %p950_p1  ;;  %p957_p5 = por %p956_p2, %p955_p8 }
  0x4e   : > { %p958_p4 = pnand %p957_p5, %p951_p6 }
  0x50   : > { %961 = shalt.err (!%p958_p4)
}
  0x51   : > { %s1579_s12 = smov 128   ;;  %245 = sbr.rel (%p1268_p12) target bundleno = 222 (0xde), region = 28 }
  0x52   : > { %814 = dma.hbm_to_vmem [thread:$0]  (!%p1227_p0), %s1275_s6, 256, %s1277_s0, %s221_s10, %s1579_s12, %s1579_s12, %s1112_s25  }
  0x53   : > { %s1311_s8 = sand.u32 (!%p1268_p12), 1, %s1092_s16   ;;  %p1580_p8 = scmp.ne.s32.totalorder (!%p1268_p12), %s1572_s27, 0 }
  0x54   : > { %s777_s11 = sshll.u32 (!%p1268_p12), %s1311_s8, 6  ;;  %s248_s26 = scalar_lea.sflag (!%p1268_p12), [#allocation3], %s1311_s8 }
  0x55   : > { %s251_s13 = scalar_lea.vmem (!%p1268_p12), [#allocation2], %s777_s11 }
  0x58   : > { %1071 = dma.done.wait (%p1580_p8), %s248_s26, 1024  }
  0x59   : > { %1073 = vsyncadd (%p1580_p8), %s248_s26, 4294966272  ;;  %s778_s0 = sshll.u32 %s1311_s8, 4  ;;  %s257_s5 = scalar_lea.sflag [#allocation6], %s1311_s8 }
  0x5a   : > { %s1321_s25 = scalar_lea.vmem [#allocation5], %s778_s0 }
  0x5b   : > { %1075 = dma.done.wait (%p1580_p8), %s257_s5, 256  }
  0x5c   : > { %1077 = vsyncadd (%p1580_p8), %s257_s5, 4294967040  ;;  %vm311_vm0 = vcmask 130048   ;;  %v301_v0 = vld [vmem:[%s251_s13] sm:$0xff]  ;;  %v302_v1 = vld [vmem:[%s251_s13 + $0x8] sm:$0xff]  ;;  %v1114_v41 = vmov 0.0   ;;  %vm446_vm9 = vcmask 1041409  }
  0x5d   : > { %v303_v2 = vld [vmem:[%s251_s13 + $0x10] sm:$0xff]  ;;  %v304_v3 = vld [vmem:[%s251_s13 + $0x18] sm:$0xff]  ;;  %v305_v4 = vld [vmem:[%s251_s13 + $0x20] sm:$0xff]  ;;  %v312_v6 = vsel %vm311_vm0, %v301_v0, -inf  ;;  %v319_v8 = vsel %vm311_vm0, %v302_v1, -inf  ;;  %vm448_vm10 = vcmask 1042434  }
  0x5e   : > { %v306_v5 = vld [vmem:[%s251_s13 + $0x28] sm:$0xff]  ;;  %v313_v7 = vsel %vm311_vm0, %v303_v2, -inf  ;;  %v307_v9 = vld [vmem:[%s251_s13 + $0x30] sm:$0xff]  ;;  %v308_v10 = vld [vmem:[%s251_s13 + $0x38] sm:$0xff]  ;;  %v314_v11 = vsel %vm311_vm0, %v305_v4, -inf  ;;  %v320_v12 = vsel %vm311_vm0, %v304_v3, -inf }
  0x5f   : > { %v321_v13 = vsel %vm311_vm0, %v306_v5, -inf  ;;  %v315_v14 = vmax.f32 %v312_v6, %v314_v11  ;;  %v316_v15 = vsel %vm311_vm0, %v307_v9, -inf  ;;  %v323_v17 = vsel %vm311_vm0, %v308_v10, -inf  ;;  %v309_v38 = vld [vmem:[%s1321_s25] sm:$0xff]  ;;  %v310_v39 = vld [vmem:[%s1321_s25 + $0x8] sm:$0xff]  ;;  %s779_s27 = sshll.u32 %s1311_s8, 2 }
  0x60   : > { %v322_v16 = vmax.f32 %v319_v8, %v321_v13  ;;  %v317_v18 = vmax.f32 %v313_v7, %v316_v15  ;;  %v324_v19 = vmax.f32 %v320_v12, %v323_v17  ;;  %vm374_vm1 = vcmp.eq.s32.totalorder %v309_v38, 0  ;;  %s292_s9 = scalar_lea.vmem [#allocation8], %s779_s27  ;;  %s552_s10 = sand.u32 1, %s1174_s21  }
  0x61   : > { %vm375_vm2 = vcmp.eq.s32.totalorder %v310_v39, 0  ;;  %vm376_vm3 = vcmp.eq.s32.totalorder %v309_v38, 1  ;;  %vm377_vm4 = vcmp.eq.s32.totalorder %v310_v39, 1  ;;  %v1345_v42 = vsel %vm374_vm1, 1.0, %v1114_v41  ;;  %s585_s6 = sshll.u32 %s292_s9, 4  ;;  %s791_s22 = sshll.u32 %s1100_s18, 6  ;;  %s1425_s6 = int_to_ptr.vmem [resolvable:$true] %s585_s6 }
  0x62   : > { %v318_v20 = vmax.f32 %v315_v14, %v317_v18  ;;  %v325_v21 = vmax.f32 %v322_v16, %v324_v19  ;;  %v1347_v43 = vsel %vm375_vm2, 1.0, %v1114_v41  ;;  %vm378_vm5 = vcmp.eq.s32.totalorder %v309_v38, 2  ;;  %s1433_s7 = scalar_lea.hbm %s1564_s3, %s791_s22  ;;  %s1441_s14 = scalar_lea.sflag [#allocation9], %s552_s10 }
  0x63   : > { %vm379_vm6 = vcmp.eq.s32.totalorder %v310_v39, 2  ;;  %v1355_v48 = vsel %vm376_vm3, 1.0, %v1114_v41  ;;  %v1357_v49 = vsel %vm377_vm4, 1.0, %v1114_v41  ;;  %v1363_v57 = vsel %vm378_vm5, 1.0, %v1114_v41  ;;  %s962_s12 = scalar_lea.vmem %s1425_s6, 64  ;;  %p1581_p3 = scmp.ne.s32.totalorder %s1573_s28, 0 }
  0x64   : > { %v326_v22 = vsub.f32 %v301_v0, %v318_v20  ;;  %v327_v23 = vsub.f32 %v302_v1, %v325_v21  ;;  %v328_v24 = vsub.f32 %v303_v2, %v318_v20  ;;  %v329_v25 = vsub.f32 %v304_v3, %v325_v21  ;;  %p963_p0 = scmp.ne.s32.totalorder %s1425_s6, %s962_s12  ;;  %s1115_s11 = smov [#allocation8]  }
  0x65   : > { %v330_v26 = vsub.f32 %v305_v4, %v318_v20  ;;  %v331_v27 = vsub.f32 %v306_v5, %v325_v21  ;;  %v1335_v28 = vsub.f32 %v307_v9, %v318_v20  ;;  %v1337_v32 = vsub.f32 %v308_v10, %v325_v21  ;;  %s966_s26 = sshll.u32 %s1115_s11, 4  ;;  %s967_s26 = int_to_ptr.vmem [resolvable:$false] %s966_s26 }
  0x66   : > { %v334_v29 = vmul.f32 1.442695, %v326_v22  ;;  %v336_v30 = vmul.f32 1.442695, %v327_v23  ;;  %v338_v31 = vmul.f32 1.442695, %v328_v24  ;;  %v508_v52 = vmul.f32 %v1345_v42, %v326_v22  ;;  %p964_p12 = pnand %p963_p0, %p1581_p3  ;;  %p969_p7 = scmp.lt.s32.totalorder %s1425_s6, %s967_s26 }
  0x67   : > { %v340_v33 = vmul.f32 1.442695, %v329_v25  ;;  %v342_v34 = vmul.f32 1.442695, %v330_v26  ;;  %v344_v35 = vmul.f32 1.442695, %v331_v27  ;;  %v509_v53 = vmul.f32 %v1347_v43, %v327_v23 }
  0x68   : > { %878 = vpow2.f32 %v334_v29  ;;  %v346_v36 = vmul.f32 1.442695, %v1335_v28  ;;  %v348_v37 = vmul.f32 1.442695, %v1337_v32  ;;  %v1365_v58 = vsel %vm379_vm6, 1.0, %v1114_v41  ;;  %p965_p13 = pneg %p964_p12  ;;  %s968_s13 = scalar_lea.vmem %s967_s26, 128 }
  0x69   : > { %880 = vpow2.f32 %v336_v30  ;;  %v510_v62 = vmul.f32 %v1355_v48, %v328_v24  ;;  %v511_v63 = vmul.f32 %v1357_v49, %v329_v25  ;;  %vm380_vm7 = vcmp.eq.s32.totalorder %v309_v38, 3  ;;  %p970_p10 = scmp.lt.s32.totalorder %s968_s13, %s962_s12 }
  0x6a   : > { %882 = vpow2.f32 %v338_v31  ;;  %vm381_vm8 = vcmp.eq.s32.totalorder %v310_v39, 3  ;;  %v512_v6 = vmul.f32 %v1363_v57, %v330_v26  ;;  %v513_v9 = vmul.f32 %v1365_v58, %v331_v27 }
  0x6b   : > { %884 = vpow2.f32 %v340_v33  ;;  %v516_v10 = vsel %vm311_vm0, %v508_v52, 0.0  ;;  %v517_v12 = vsel %vm311_vm0, %v510_v62, 0.0  ;;  %v523_v13 = vsel %vm311_vm0, %v509_v53, 0.0  ;;  %p971_p9 = por %p970_p10, %p969_p7 }
  0x6c   : > { %886 = vpow2.f32 %v342_v34  ;;  %v524_v14 = vsel %vm311_vm0, %v511_v63, 0.0  ;;  %v787_v15 = vsel %vm380_vm7, 1.0, %v1114_v41  ;;  %v788_v16 = vsel %vm381_vm8, 1.0, %v1114_v41 }
  0x6d   : > { %888 = vpow2.f32 %v344_v35  ;;  %v518_v17 = vadd.f32 %v517_v12, %v516_v10  ;;  %v525_v18 = vadd.f32 %v524_v14, %v523_v13  ;;  %v514_v19 = vmul.f32 %v787_v15, %v1335_v28  ;;  %p972_p11 = pnand %p971_p9, %p965_p13 }
  0x6e   : > { %890 = vpow2.f32 %v346_v36  ;;  %v515_v20 = vmul.f32 %v788_v16, %v1337_v32  ;;  %v519_v21 = vsel %vm311_vm0, %v512_v6, 0.0  ;;  %v526_v22 = vsel %vm311_vm0, %v513_v9, 0.0 }
  0x6f   : > { %892 = vpow2.f32 %v348_v37  ;;  %v520_v23 = vadd.f32 %v519_v21, %v518_v17  ;;  %v527_v24 = vadd.f32 %v526_v22, %v525_v18  ;;  %v521_v25 = vsel %vm311_vm0, %v514_v19, 0.0 }
  0x70   : > { %v528_v26 = vsel %vm311_vm0, %v515_v20, 0.0  ;;  %vm450_vm11 = vcmask 1043459   ;;  %vm453_vm12 = vcmask 125952  }
  0x71   : > { %v1385_v29 = vadd.f32 %v521_v25, %v520_v23  ;;  %v1387_v30 = vadd.f32 %v528_v26, %v527_v24 }
  0x72   : > { %v1343_v40 = vpop.eup %878 }
  0x73   : > { %v1349_v44 = vpop.eup %880  ;;  %v350_v45 = vsel %vm311_vm0, %v1343_v40, 0.0 }
  0x74   : > { %v883_v46 = vpop.eup %882  ;;  %v357_v47 = vsel %vm311_vm0, %v1349_v44, 0.0 }
  0x75   : > { %v885_v50 = vpop.eup %884  ;;  %v351_v51 = vsel %vm311_vm0, %v883_v46, 0.0 }
  0x76   : > { %v887_v54 = vpop.eup %886  ;;  %v352_v55 = vadd.f32 %v351_v51, %v350_v45  ;;  %v358_v56 = vsel %vm311_vm0, %v885_v50, 0.0 }
  0x77   : > { %v889_v59 = vpop.eup %888  ;;  %v353_v60 = vsel %vm311_vm0, %v887_v54, 0.0  ;;  %v359_v61 = vadd.f32 %v358_v56, %v357_v47 }
  0x78   : > { %v891_v0 = vpop.eup %890  ;;  %v354_v1 = vadd.f32 %v353_v60, %v352_v55  ;;  %v360_v2 = vsel %vm311_vm0, %v889_v59, 0.0 }
  0x79   : > { %v893_v3 = vpop.eup %892  ;;  %v355_v4 = vsel %vm311_vm0, %v891_v0, 0.0  ;;  %v361_v5 = vadd.f32 %v360_v2, %v359_v61 }
  0x7a   : > { %v356_v7 = vadd.f32 %v355_v4, %v354_v1  ;;  %v362_v8 = vsel %vm311_vm0, %v893_v3, 0.0 }
  0x7b   : > { %v363_v11 = vadd.f32 %v362_v8, %v361_v5 }
  0x7c   : > { %894 = vrcp.f32 %v356_v7 }
  0x7d   : > { %896 = vrcp.f32 %v363_v11 }
  0x7e   : > { %898 = vlog2.f32 %v356_v7 }
  0x7f   : > { %900 = vlog2.f32 %v363_v11 }
  0x86   : > { %v895_v27 = vpop.eup %894 }
  0x87   : > { %v897_v28 = vpop.eup %896  ;;  %v366_v31 = vmul.f32 %v895_v27, %v1343_v40  ;;  %v368_v32 = vmul.f32 %v895_v27, %v883_v46  ;;  %v370_v33 = vmul.f32 %v895_v27, %v887_v54  ;;  %v372_v34 = vmul.f32 %v895_v27, %v891_v0 }
  0x88   : > { %v367_v35 = vmul.f32 %v897_v28, %v1349_v44  ;;  %v369_v36 = vmul.f32 %v897_v28, %v885_v50  ;;  %v371_v37 = vmul.f32 %v897_v28, %v889_v59  ;;  %v373_v38 = vmul.f32 %v897_v28, %v893_v3  ;;  %v899_v5 = vpop.eup %898 }
  0x89   : > { %v455_v39 = vadd.f32 %v1345_v42, %v366_v31  ;;  %v457_v41 = vadd.f32 %v1355_v48, %v368_v32  ;;  %v459_v45 = vadd.f32 %v1363_v57, %v370_v33  ;;  %v461_v47 = vadd.f32 %v787_v15, %v372_v34  ;;  %v901_v10 = vpop.eup %900 }
  0x8a   : > { %v456_v51 = vadd.f32 %v1347_v43, %v367_v35  ;;  %v458_v52 = vadd.f32 %v1357_v49, %v369_v36  ;;  %v460_v40 = vadd.f32 %v1365_v58, %v371_v37  ;;  %v462_v46 = vadd.f32 %v788_v16, %v373_v38 }
  0x8b   : > { %v463_v53 = vsel %vm311_vm0, %v455_v39, 0.0  ;;  %v472_v44 = vsel %vm311_vm0, %v457_v41, 0.0  ;;  %v481_v50 = vsel %vm311_vm0, %v459_v45, 0.0  ;;  %v490_v54 = vsel %vm311_vm0, %v461_v47, 0.0 }
  0x8c   : > { %v464_v55 = vsel %vm311_vm0, %v456_v51, 0.0  ;;  %v473_v56 = vsel %vm311_vm0, %v458_v52, 0.0  ;;  %v482_v59 = vsel %vm311_vm0, %v460_v40, 0.0  ;;  %v491_v60 = vsel %vm311_vm0, %v462_v46, 0.0 }
  0x8d   : > { %v465_v61 = vadd.f32 %v464_v55, %v463_v53  ;;  %v474_v62 = vadd.f32 %v473_v56, %v472_v44  ;;  %v483_v63 = vadd.f32 %v482_v59, %v481_v50  ;;  %v492_v0 = vadd.f32 %v491_v60, %v490_v54 }
  0x8e   : > { %v398_v1 = vmul.f32 %v1345_v42, %v366_v31  ;;  %v399_v2 = vmul.f32 %v1347_v43, %v367_v35  ;;  %v400_v3 = vmul.f32 %v1355_v48, %v368_v32  ;;  %v401_v4 = vmul.f32 %v1357_v49, %v369_v36 }
  0x8f   : > { %v466_v6 = vrot.slane %v465_v61, 4  ;;  %v475_v7 = vrot.slane %v474_v62, 4  ;;  %v484_v8 = vrot.slane %v483_v63, 4  ;;  %v493_v9 = vrot.slane %v492_v0, 4 }
  0x90   : > { %v402_v11 = vmul.f32 %v1363_v57, %v370_v33  ;;  %v403_v12 = vmul.f32 %v1365_v58, %v371_v37  ;;  %v404_v13 = vmul.f32 %v787_v15, %v372_v34  ;;  %v405_v42 = vmul.f32 %v788_v16, %v373_v38 }
  0x91   : > { %v467_v43 = vadd.f32 %v466_v6, %v465_v61  ;;  %v476_v14 = vadd.f32 %v475_v7, %v474_v62  ;;  %v485_v48 = vadd.f32 %v484_v8, %v483_v63  ;;  %v494_v17 = vadd.f32 %v493_v9, %v492_v0 }
  0x92   : > { %v406_v49 = vsel %vm311_vm0, %v398_v1, 0.0  ;;  %v407_v18 = vsel %vm311_vm0, %v399_v2, 0.0  ;;  %v415_v19 = vsel %vm311_vm0, %v400_v3, 0.0  ;;  %v416_v20 = vsel %vm311_vm0, %v401_v4, 0.0 }
  0x93   : > { %v468_v57 = vrot.slane %v467_v43, 2  ;;  %v477_v21 = vrot.slane %v476_v14, 2  ;;  %v486_v58 = vrot.slane %v485_v48, 2  ;;  %v495_v15 = vrot.slane %v494_v17, 2 }
  0x94   : > { %v408_v16 = vadd.f32 %v407_v18, %v406_v49  ;;  %v417_v22 = vadd.f32 %v416_v20, %v415_v19  ;;  %v424_v23 = vsel %vm311_vm0, %v402_v11, 0.0  ;;  %v425_v24 = vsel %vm311_vm0, %v403_v12, 0.0 }
  0x95   : > { %v469_v25 = vadd.f32 %v468_v57, %v467_v43  ;;  %v478_v26 = vadd.f32 %v477_v21, %v476_v14  ;;  %v487_v27 = vadd.f32 %v486_v58, %v485_v48  ;;  %v496_v28 = vadd.f32 %v495_v15, %v494_v17 }
  0x96   : > { %v409_v31 = vrot.slane %v408_v16, 4  ;;  %v418_v32 = vrot.slane %v417_v22, 4  ;;  %v426_v33 = vadd.f32 %v425_v24, %v424_v23  ;;  %v433_v34 = vsel %vm311_vm0, %v404_v13, 0.0 }
  0x97   : > { %v470_v35 = vrot.slane %v469_v25, 1  ;;  %v479_v36 = vrot.slane %v478_v26, 1  ;;  %v488_v37 = vrot.slane %v487_v27, 1  ;;  %v497_v38 = vrot.slane %v496_v28, 1 }
  0x98   : > { %v410_v39 = vadd.f32 %v409_v31, %v408_v16  ;;  %v419_v41 = vadd.f32 %v418_v32, %v417_v22  ;;  %v427_v45 = vrot.slane %v426_v33, 4  ;;  %v434_v47 = vsel %vm311_vm0, %v405_v42, 0.0 }
  0x99   : > { %v471_v51 = vadd.f32 %v470_v35, %v469_v25  ;;  %v480_v52 = vadd.f32 %v479_v36, %v478_v26  ;;  %v489_v40 = vadd.f32 %v488_v37, %v487_v27  ;;  %v498_v46 = vadd.f32 %v497_v38, %v496_v28 }
  0x9a   : > { %v411_v53 = vrot.slane %v410_v39, 2  ;;  %v420_v44 = vrot.slane %v419_v41, 2  ;;  %v428_v50 = vadd.f32 %v427_v45, %v426_v33  ;;  %v435_v54 = vadd.f32 %v434_v47, %v433_v34 }
  0x9b   : > { %v503_v55 = vsel %vm446_vm9, %v480_v52, %v471_v51  ;;  %v531_v56 = vmul.f32 0.6931472, %v899_v5  ;;  %v533_v59 = vmul.f32 0.6931472, %v901_v10 }
  0x9c   : > { %v504_v60 = vsel %vm448_vm10, %v489_v40, %v503_v55  ;;  %v412_v61 = vadd.f32 %v411_v53, %v410_v39  ;;  %v421_v62 = vadd.f32 %v420_v44, %v419_v41  ;;  %v429_v63 = vrot.slane %v428_v50, 2 }
  0x9d   : > { %v505_v0 = vsel %vm450_vm11, %v498_v46, %v504_v60  ;;  %v436_v1 = vrot.slane %v435_v54, 4  ;;  %v534_v2 = vsub.f32 %v531_v56, %v1385_v29  ;;  %v535_v3 = vsub.f32 %v533_v59, %v1387_v30 }
  0x9e   : > { %507 = vst.msk [vmem:[%s292_s9] sm:$0xf] %vm453_vm12, %v505_v0  ;;  %v413_v4 = vrot.slane %v412_v61, 1  ;;  %v422_v5 = vrot.slane %v421_v62, 1  ;;  %v430_v6 = vadd.f32 %v429_v63, %v428_v50 }
  0x9f   : > { %v437_v7 = vadd.f32 %v436_v1, %v435_v54  ;;  %v536_v8 = vsel %vm311_vm0, %v534_v2, 0.0  ;;  %v537_v9 = vsel %vm311_vm0, %v535_v3, 0.0 }
  0xa0   : > { %975 = shalt.err (!%p972_p11)
}
  0xa1   : > { %s976_s0 = scalar_lea.hbm %s1433_s7, 64  ;;  %s980_s9 = scalar_lea.hbm %s1564_s3, 128 }
  0xa2   : > { %p977_p1 = scmp.ne.s32.totalorder %s1433_s7, %s976_s0  ;;  %p981_p5 = scmp.lt.u32.totalorder %s1433_s7, %s1564_s3 }
  0xa3   : > { %p982_p4 = scmp.lt.u32.totalorder %s980_s9, %s976_s0  ;;  %p984_p0 = scmp.lt.u32.totalorder %s976_s0, %s1433_s7 }
  0xa4   : > { %p978_p6 = pnand %p977_p1, %p1581_p3 }
  0xa5   : > { %p983_p8 = por %p982_p4, %p981_p5 }
  0xa6   : > { %p979_p2 = pneg %p978_p6 }
  0xa7   : > { %p985_p12 = por %p984_p0, %p983_p8 }
  0xa9   : > { %p986_p13 = pnand %p985_p12, %p979_p2 }
  0xab   : > { %989 = shalt.err (!%p986_p13)
}
  0xac   : > { %803 = dma.vmem_to_hbm [thread:$0]  (%p1581_p3), %s1425_s6, 64, %s1433_s7, %s1441_s14   ;;  %v414_v29 = vadd.f32 %v413_v4, %v412_v61  ;;  %v423_v30 = vadd.f32 %v422_v5, %v421_v62  ;;  %v431_v10 = vrot.slane %v430_v6, 1  ;;  %v538_v11 = vadd.f32 %v537_v9, %v536_v8 }
  0xad   : > { %v438_v12 = vrot.slane %v437_v7, 2  ;;  %s285_s24 = scalar_lea.vmem [#allocation7], %s779_s27  ;;  %s1476_s11 = scalar_lea.hbm %s1563_s2, %s791_s22  ;;  %vm545_vm13 = vcmask 122880  }
  0xae   : > { %v432_v13 = vadd.f32 %v431_v10, %v430_v6  ;;  %v539_v42 = vrot.slane %v538_v11, 4  ;;  %v447_v14 = vsel %vm446_vm9, %v423_v30, %v414_v29  ;;  %s571_s12 = sshll.u32 %s285_s24, 4  ;;  %s298_s27 = scalar_lea.vmem [#allocation10], %s1311_s8  ;;  %s1469_s12 = int_to_ptr.vmem [resolvable:$true] %s571_s12 }
  0xaf   : > { %v439_v43 = vadd.f32 %v438_v12, %v437_v7  ;;  %s1482_s26 = sshll.u32 %s298_s27, 4  ;;  %s793_s13 = sshll.u32 %s1100_s18, 4  ;;  %s1509_s26 = int_to_ptr.vmem [resolvable:$true] %s1482_s26 }
  0xb0   : > { %v540_v48 = vadd.f32 %v539_v42, %v538_v11  ;;  %v449_v49 = vsel %vm448_vm10, %v432_v13, %v447_v14  ;;  %s548_s0 = scalar_lea.sflag [#allocation4], %s1311_s8  ;;  %s990_s5 = scalar_lea.vmem %s1469_s12, 64 }
  0xb1   : > { %v440_v17 = vrot.slane %v439_v43, 1  ;;  %p991_p7 = scmp.ne.s32.totalorder %s1469_s12, %s990_s5  ;;  %s1116_s22 = smov [#allocation7]  }
  0xb2   : > { %v541_v18 = vrot.slane %v540_v48, 2  ;;  %s994_s25 = sshll.u32 %s1116_s22, 4  ;;  %s995_s25 = int_to_ptr.vmem [resolvable:$false] %s994_s25 }
  0xb3   : > { %v441_v19 = vadd.f32 %v440_v17, %v439_v43  ;;  %p992_p10 = pnand %p991_p7, %p1581_p3  ;;  %s996_s9 = scalar_lea.vmem %s995_s25, 128 }
  0xb4   : > { %v542_v20 = vadd.f32 %v541_v18, %v540_v48  ;;  %p997_p11 = scmp.lt.s32.totalorder %s1469_s12, %s995_s25  ;;  %p998_p1 = scmp.lt.s32.totalorder %s996_s9, %s990_s5 }
  0xb5   : > { %v451_v57 = vsel %vm450_vm11, %v441_v19, %v449_v49  ;;  %p993_p9 = pneg %p992_p10 }
  0xb6   : > { %454 = vst.msk [vmem:[%s285_s24] sm:$0xf] %vm453_vm12, %v451_v57  ;;  %v543_v21 = vrot.slane %v542_v20, 1  ;;  %p999_p6 = por %p998_p1, %p997_p11 }
  0xb8   : > { %p1000_p2 = pnand %p999_p6, %p993_p9 }
  0xba   : > { %1003 = shalt.err (!%p1000_p2)
}
  0xbb   : > { %s1004_s10 = scalar_lea.hbm %s1476_s11, 64  ;;  %s1008_s6 = scalar_lea.hbm %s1563_s2, 128 }
  0xbc   : > { %p1005_p5 = scmp.ne.s32.totalorder %s1476_s11, %s1004_s10  ;;  %p1009_p0 = scmp.lt.u32.totalorder %s1476_s11, %s1563_s2 }
  0xbd   : > { %p1010_p12 = scmp.lt.u32.totalorder %s1008_s6, %s1004_s10  ;;  %p1012_p7 = scmp.lt.u32.totalorder %s1004_s10, %s1476_s11 }
  0xbe   : > { %p1006_p4 = pnand %p1005_p5, %p1581_p3 }
  0xbf   : > { %p1011_p13 = por %p1010_p12, %p1009_p0 }
  0xc0   : > { %p1007_p8 = pneg %p1006_p4 }
  0xc1   : > { %p1013_p10 = por %p1012_p7, %p1011_p13 }
  0xc3   : > { %p1014_p9 = pnand %p1013_p10, %p1007_p8 }
  0xc5   : > { %1017 = shalt.err (!%p1014_p9)
}
  0xc6   : > { %802 = dma.vmem_to_hbm [thread:$0]  (%p1581_p3), %s1469_s12, 64, %s1476_s11, %s548_s0   ;;  %v544_v58 = vadd.f32 %v543_v21, %v542_v20 }
  0xc7   : > { %s597_s9 = scalar_lea.hbm %s1565_s4, %s793_s13  ;;  %s1018_s10 = scalar_lea.vmem %s1509_s26, 16 }
  0xc8   : > { %546 = vst.msk [vmem:[%s298_s27] sm:$0x1] %vm545_vm13, %v544_v58  ;;  %p1019_p11 = scmp.ne.s32.totalorder %s1509_s26, %s1018_s10  ;;  %s1117_s12 = smov [#allocation10]  }
  0xc9   : > { %s1022_s11 = sshll.u32 %s1117_s12, 4  ;;  %s1023_s11 = int_to_ptr.vmem [resolvable:$false] %s1022_s11 }
  0xca   : > { %p1020_p1 = pnand %p1019_p11, %p1581_p3  ;;  %s1024_s0 = scalar_lea.vmem %s1023_s11, 32 }
  0xcb   : > { %p1025_p2 = scmp.lt.s32.totalorder %s1509_s26, %s1023_s11  ;;  %p1026_p5 = scmp.lt.s32.totalorder %s1024_s0, %s1018_s10 }
  0xcc   : > { %p1021_p6 = pneg %p1020_p1 }
  0xcd   : > { %p1027_p4 = por %p1026_p5, %p1025_p2 }
  0xcf   : > { %p1028_p8 = pnand %p1027_p4, %p1021_p6 }
  0xd1   : > { %1031 = shalt.err (!%p1028_p8)
}
  0xd2   : > { %s1032_s18 = scalar_lea.hbm %s597_s9, 16  ;;  %s1036_s13 = scalar_lea.hbm %s1565_s4, 32 }
  0xd3   : > { %p1033_p0 = scmp.ne.s32.totalorder %s597_s9, %s1032_s18  ;;  %p1037_p7 = scmp.lt.u32.totalorder %s597_s9, %s1565_s4 }
  0xd4   : > { %p1038_p10 = scmp.lt.u32.totalorder %s1036_s13, %s1032_s18  ;;  %p1040_p11 = scmp.lt.u32.totalorder %s1032_s18, %s597_s9 }
  0xd5   : > { %p1034_p12 = pnand %p1033_p0, %p1581_p3 }
  0xd6   : > { %p1039_p9 = por %p1038_p10, %p1037_p7 }
  0xd7   : > { %p1035_p13 = pneg %p1034_p12 }
  0xd8   : > { %p1041_p1 = por %p1040_p11, %p1039_p9 }
  0xda   : > { %p1042_p6 = pnand %p1041_p1, %p1035_p13 }
  0xdc   : > { %1045 = shalt.err (!%p1042_p6)
}
  0xdd   : > { %804 = dma.vmem_to_hbm [thread:$0]  (%p1581_p3), %s1509_s26, 16, %s597_s9, %s1441_s14  }
  0xde PF: > { %s611_s6 = sand.u32 1, %s1088_s15   ;;  %p1582_p2 = scmp.ne.s32.totalorder %s1574_s30, 0 }
  0xdf   : > { %p1583_p5 = scmp.ge.s32.totalorder %s1108_s20, 2  ;;  %s612_s7 = scalar_lea.sflag [#allocation4], %s611_s6 }
  0xe1   : > { %p816_p4 = pnand %p1583_p5, %p1582_p2 }
  0xe3   : > { %1079 = dma.done.wait (!%p816_p4), %s612_s7, 64  }
  0xe4   : > { %1081 = vsyncadd (!%p816_p4), %s612_s7, 4294967232  ;;  %s1584_s22 = sadd.s32 4294967294, %s1108_s20  }
  0xe5   : > { %s620_s5 = sand.u32 1, %s1584_s22  }
  0xe6   : > { %s621_s25 = scalar_lea.sflag [#allocation9], %s620_s5 }
  0xe7   : > { %1083 = dma.done.wait (!%p816_p4), %s621_s25, 80  }
  0xe8   : > { %1085 = vsyncadd (!%p816_p4), %s621_s25, 4294967216  ;;  %s27_s20 = sadd.s32 1, %s1108_s20   ;;  %s1585_s15 = smov %s1092_s16 }
  0xe9   : > { %p24_p3 = scmp.ge.s32.totalorder %s27_s20, 4   ;;  %s1586_s16 = smov %s1096_s17 }
  0xea   : > { %s1587_s17 = smov %s1205_s29  ;;  %s1588_s18 = smov %s1104_s19 }
  0xeb   : > { %s1589_s19 = smov %s1591_s23  ;;  %26 = sbr.rel (!%p24_p3) target bundleno = 12 (0xc), region = 118 }
  0xf2   :  { %634 = vsyncpa [#allocation3], 1 }
  0xf3   :  { %636 = vsyncpa [#allocation3 + $0x1], 1 }
  0xf4   :  { %637 = vsyncpa [#allocation6], 1 }
  0xf5   :  { %639 = vsyncpa [#allocation6 + $0x1], 1 }
  0xf6   :  { %640 = vsyncpa [#allocation4], 1 }
  0xf7   :  { %642 = vsyncpa [#allocation4 + $0x1], 1 }
  0xf8   :  { %643 = vsyncpa [#allocation9], 1 }
  0xf9   :  { %645 = vsyncpa [#allocation9 + $0x1], 1 }

</bundles_post_ra>
